<compile_context>
chip_gen: v6e
topology: v6e:2x2x1
jax: 0.10.0
libtpu: 0.0.40
codegen_flags: <defaults>
</compile_context>

<pallas_src>
import functools

import jax
import jax.numpy as jnp
import numpy as np
from jax import lax
from jax.experimental import pallas as pl
from jax.experimental.pallas import tpu as pltpu

NUM_ROT_SECTIONS = 3            # sections hit by the spatial 3x3 rotation (torch [..., :3, :28])
ROT_COLS = 28                   # per-section columns entering the RoPE path (torch :28)
MIX_SHIFTS = (-2, -1, 0, 1, 2)  # section offsets (a - c) used by the 3x3 mix


@functools.lru_cache(maxsize=None)
def _pltpu_roll_matches_jnp():
    """pltpu.roll is expected to match jnp.roll (out[i] = x[(i - shift) % n]); probe
    once on-device so the main kernel is correct even if the direction differs."""
    def kernel(x_ref, o_ref):
        o_ref[...] = pltpu.roll(x_ref[...], 1, 1)

    x = jnp.arange(8 * 128, dtype=jnp.float32).reshape(8, 128)
    got = pl.pallas_call(
        kernel, out_shape=jax.ShapeDtypeStruct((8, 128), jnp.float32))(x)
    return bool(jnp.array_equal(got, jnp.roll(x, 1, axis=1)))


def _lane_roll(x, shift, flip):
    """Roll along the last (lane) axis with jnp.roll semantics."""
    w = x.shape[-1]
    s = shift % w
    if flip:
        s = (w - s) % w
    return pltpu.roll(x, s, x.ndim - 1)


def _rope_kernel(params_ref, tbl_k_ref, tbl_q_ref, q_ref, k_ref,
                 q_out_ref, k_out_ref, *, roll_flip):
    """Per grid step (b, n):
         params: (1, TN, P)   f32, P = 10+K: [rot 3x3 row-major (9), 1.0, locations(K)]
         tbl_k:  (7, P, E)    f32 static selector tables (see _build_coeff_table)
         tbl_q:  (7, P, H*E)  f32 = tbl_k tiled H times along lanes
         q:      (1, TN, H*E) / k: (1, TN, E)   (bf16 or f32, lane-dense)
       Outputs mirror q / k.
    """
    f32 = jnp.float32
    par = params_ref[0]                                     # (TN, P)

    def transform(x, tbl_ref):
        # Per-token, per-column coefficient maps via tiny MXU matmuls (MXU is idle
        # in this otherwise elementwise kernel).
        def cmap(i):
            return jnp.dot(par, tbl_ref[i], precision=lax.Precision.HIGHEST,
                           preferred_element_type=f32)      # (TN, W)

        # --- spatial 3x3 rotation of the first 3 sections (torch einsum
        #     'bnac,bn(h)cd->bn(h)ad'), lane-dense:
        #     y[col] = sum_s C_s[col] * x[col - 28*s]; identity for untouched cols.
        y = cmap(2) * x
        y = y + cmap(0) * _lane_roll(x, -2 * ROT_COLS, roll_flip)
        y = y + cmap(1) * _lane_roll(x, -1 * ROT_COLS, roll_flip)
        y = y + cmap(3) * _lane_roll(x, 1 * ROT_COLS, roll_flip)
        y = y + cmap(4) * _lane_roll(x, 2 * ROT_COLS, roll_flip)

        # --- interleaved RoPE on the first 2*F*K columns.  Columns outside the
        #     rotated range get angle 0, so cos=1 / sin=0 gives the identity for free.
        ang_even = cmap(5)       # +freq*loc on even columns of the rotated range
        ang_odd = cmap(6)        # -freq*loc on odd columns of the rotated range
        z = jnp.cos(ang_even + ang_odd) * y
        z = z + jnp.sin(ang_even) * _lane_roll(y, -1, roll_flip)
        z = z + jnp.sin(ang_odd) * _lane_roll(y, 1, roll_flip)
        return z

    q_out_ref[0] = transform(q_ref[0].astype(f32), tbl_q_ref).astype(q_out_ref.dtype)
    k_out_ref[0] = transform(k_ref[0].astype(f32), tbl_k_ref).astype(k_out_ref.dtype)


def _build_coeff_table(freqs, num_locs, hidden):
    """Static (7, P, E) selector table, E = U*28, P = 10 + K.

    Contracting the per-token params vector [rot(9), 1.0, loc(K)] with row i gives:
      i = 0..4 : per-column coefficient for the lane roll by (i-2)*28 used by the
                 3x3 section mix (the constant-1 entry supplies the identity for
                 columns not touched by the spatial rotation),
      i = 5    : +freq weights on even RoPE columns -> angles for the "even" term,
      i = 6    : -freq weights on odd  RoPE columns -> angles for the "odd" term.
    """
    freqs = freqs.astype(jnp.float32)
    F = freqs.shape[0]
    K = num_locs
    E = hidden
    P = 10 + K
    cols = np.arange(E)
    sec = cols // ROT_COLS
    rot_span = NUM_ROT_SECTIONS * ROT_COLS

    mix = np.zeros((5, P, E), np.float32)
    for sidx, s in enumerate(MIX_SHIFTS):
        for a in range(NUM_ROT_SECTIONS):
            c = a - s
            if 0 <= c < NUM_ROT_SECTIONS:
                mask = (cols < rot_span) & (sec == a)
                mix[sidx, 3 * a + c, mask] = 1.0
    mix[MIX_SHIFTS.index(0), 9, cols >= rot_span] = 1.0    # passthrough identity

    n_rope_cols = 2 * F * K
    pair = cols // 2
    in_rope = cols < n_rope_cols
    even = cols % 2 == 0
    f_idx = np.minimum(pair // K, F - 1)
    k_idx = pair % K
    freq_col = jnp.where(jnp.asarray(in_rope), freqs[f_idx], 0.0)          # (E,)
    sel_e = np.zeros((K, E), np.float32)
    sel_o = np.zeros((K, E), np.float32)
    for kk in range(K):
        sel_e[kk] = (in_rope & even & (k_idx == kk)).astype(np.float32)
        sel_o[kk] = (in_rope & ~even & (k_idx == kk)).astype(np.float32)
    ang_even = jnp.zeros((P, E), jnp.float32).at[10:10 + K].set(
        jnp.asarray(sel_e) * freq_col)
    ang_odd = jnp.zeros((P, E), jnp.float32).at[10:10 + K].set(
        -jnp.asarray(sel_o) * freq_col)
    return jnp.concatenate([jnp.asarray(mix), ang_even[None], ang_odd[None]], axis=0)


def _pick_token_tile(n_tokens, heads, hidden, itemsize):
    """Largest token tile (multiple of 8 dividing N, <= 128) whose working set fits a
    conservative ~24 MiB budget (headroom for v7x's 64 MiB VMEM)."""
    w = heads * hidden

    def vmem_est(tn):
        io = 2 * 2 * tn * (w + hidden) * itemsize          # double-buffered in + out
        tmp = 8 * tn * w * 4                               # f32 intermediates
        tbl = 2 * 7 * 16 * (w + hidden) * 4                # coefficient tables
        return io + tmp + tbl

    budget = 24 * 1024 * 1024
    fallback = None
    for cand in (128, 64, 32, 16, 8):
        if n_tokens % cand == 0:
            if fallback is None:
                fallback = cand
            if vmem_est(cand) <= budget:
                return cand
    return fallback if fallback is not None else n_tokens


def rope_forward(freqs, key_emb, query_emb, locations, rotations, *, sections):
    B, N, H, E = query_emb.shape
    U = sections
    F = freqs.shape[0]
    K = locations.shape[-1]
    assert key_emb.shape == (B, N, E)
    assert locations.shape == (B, N, K) and rotations.shape == (B, N, 3, 3)
    assert U >= NUM_ROT_SECTIONS and E % U == 0
    # TODO(synk): DebuggingModel uses a per-section width of exactly 28 (qkdim=224,
    # sections=8).  The general RoPE tail case (per-section width > 28) needs an extra
    # output-column permutation and is not implemented here.
    assert E // U == ROT_COLS, "per-section width must be 28 (DebuggingModel config)"
    assert 2 * F * K <= E

    W = H * E
    q_flat = query_emb.reshape(B, N, W)                    # free metadata reshape
    P = 10 + K

    # Tiny per-token parameter vector: [3x3 rotation row-major, 1.0, locations].
    params = jnp.concatenate(
        [rotations.reshape(B, N, 9).astype(jnp.float32),
         jnp.ones((B, N, 1), jnp.float32),
         locations.astype(jnp.float32)], axis=-1)          # (B, N, P)

    tbl_k = _build_coeff_table(freqs, K, E)                # (7, P, E)
    tbl_q = jnp.tile(tbl_k, (1, 1, H))                     # (7, P, W)

    tn = _pick_token_tile(N, H, E, q_flat.dtype.itemsize)
    assert N % tn == 0
    grid = (B, N // tn)

    kernel = functools.partial(_rope_kernel,
                               roll_flip=not _pltpu_roll_matches_jnp())

    grid_spec = pltpu.PrefetchScalarGridSpec(
        num_scalar_prefetch=0,
        grid=grid,
        in_specs=[
            pl.BlockSpec((1, tn, P), lambda b, n: (b, n, 0)),     # params
            pl.BlockSpec((7, P, E), lambda b, n: (0, 0, 0)),      # k coeff table
            pl.BlockSpec((7, P, W), lambda b, n: (0, 0, 0)),      # q coeff table
            pl.BlockSpec((1, tn, W), lambda b, n: (b, n, 0)),     # q (lane-dense)
            pl.BlockSpec((1, tn, E), lambda b, n: (b, n, 0)),     # k (lane-dense)
        ],
        out_specs=[
            pl.BlockSpec((1, tn, W), lambda b, n: (b, n, 0)),
            pl.BlockSpec((1, tn, E), lambda b, n: (b, n, 0)),
        ],
    )
    q_out, k_out = pl.pallas_call(
        kernel,
        out_shape=(jax.ShapeDtypeStruct((B, N, W), q_flat.dtype),
                   jax.ShapeDtypeStruct((B, N, E), key_emb.dtype)),
        grid_spec=grid_spec,
        compiler_params=pltpu.CompilerParams(
            dimension_semantics=("parallel", "parallel"),
            vmem_limit_bytes=48 * 1024 * 1024),
    )(params, tbl_k, tbl_q, q_flat, key_emb)

    return k_out, q_out.reshape(B, N, H, E)


def rope_reference_np(freqs, key_emb, query_emb, locations, rotations, sections):
    """Direct numpy (float64) translation of the PyTorch RoPE.forward."""
    U = sections
    freqs = np.asarray(freqs, np.float64)
    k = np.asarray(key_emb, np.float64)
    q = np.asarray(query_emb, np.float64)
    loc = np.asarray(locations, np.float64)
    rot = np.asarray(rotations, np.float64)
    B, N, H, _ = q.shape
    q = q.reshape(B, N, H, U, -1)
    k = k.reshape(B, N, U, -1)
    rotQ, statQ = q[..., :3, :28], q[..., 3:, :28]
    qr = q[..., 28:].reshape(B, N, H, -1)
    rotK, statK = k[..., :3, :28], k[..., 3:, :28]
    qk = k[..., 28:].reshape(B, N, -1)
    rotQ = np.einsum("bnac,bnhcd->bnhad", rot, rotQ)
    rotK = np.einsum("bnac,bncd->bnad", rot, rotK)
    q = np.concatenate([rotQ, statQ], axis=-2).reshape(B, N, H, -1)
    k = np.concatenate([rotK, statK], axis=-2).reshape(B, N, -1)
    fm = np.einsum("i,ljk->ljik", freqs, loc).reshape(B, N, -1)
    q = q.reshape(B, N, H, -1, 2)
    k = k.reshape(B, N, -1, 2)
    s, c = np.sin(fm), np.cos(fm)
    fake = np.stack([np.stack([c, s]), np.stack([-s, c])])
    Dr = fake.shape[-1]
    rQ, sQ = q[..., :Dr, :], q[..., Dr:, :]
    rK, sK = k[..., :Dr, :], k[..., Dr:, :]
    rQ = np.einsum("robnd,bnhdo->bnhdr", fake, rQ)
    rK = np.einsum("robnd,bndo->bndr", fake, rK)
    q = np.concatenate([rQ, sQ], axis=-2).reshape(B, N, H, -1)
    k = np.concatenate([rK, sK], axis=-2).reshape(B, N, -1)
    q = np.concatenate([q, qr], axis=-1)
    k = np.concatenate([k, qk], axis=-1)
    return k, q


if __name__ == "__main__":
    B, N, H = 2, 512, 2          # batch, tokens, heads (small, but 8 grid steps)
    U = 8                        # sections -> per-section width 28 (DebuggingModel)
    E = U * ROT_COLS             # hidden = qkdim = 224
    F, K = 7, 3                  # frequencies x location coords -> 21 rotated pairs

    root = jax.random.PRNGKey(0)
    kf, kq, kk, kl, kr = jax.random.split(root, 5)

    freqs = jax.random.normal(kf, (F,), dtype=jnp.float32)   # module param init
    query_emb = jax.random.normal(kq, (B, N, H, E), dtype=jnp.float32)
    key_emb = jax.random.normal(kk, (B, N, E), dtype=jnp.float32)
    locations = jax.random.normal(kl, (B, N, K), dtype=jnp.float32)
    rotations = jax.random.normal(kr, (B, N, 3, 3), dtype=jnp.float32)

    # float32 I/O path
    k_out, q_out = rope_forward(freqs, key_emb, query_emb, locations, rotations,
                                sections=U)
    k_out, q_out = jax.block_until_ready((k_out, q_out))
    k_ref, q_ref = rope_reference_np(freqs, key_emb, query_emb, locations,
                                     rotations, U)
    assert k_out.shape == (B, N, E) and q_out.shape == (B, N, H, E)
    np.testing.assert_allclose(np.asarray(k_out), k_ref, rtol=1e-3, atol=1e-3)
    np.testing.assert_allclose(np.asarray(q_out), q_ref, rtol=1e-3, atol=1e-3)

    # bf16 I/O path (halves HBM traffic; math stays f32 inside the kernel).
    q_bf = query_emb.astype(jnp.bfloat16)
    k_bf = key_emb.astype(jnp.bfloat16)
    k_out16, q_out16 = rope_forward(freqs, k_bf, q_bf, locations, rotations,
                                    sections=U)
    k_out16, q_out16 = jax.block_until_ready((k_out16, q_out16))
    assert k_out16.dtype == jnp.bfloat16 and q_out16.dtype == jnp.bfloat16
    k_ref16, q_ref16 = rope_reference_np(freqs,
                                         np.asarray(k_bf.astype(jnp.float32)),
                                         np.asarray(q_bf.astype(jnp.float32)),
                                         locations, rotations, U)
    np.testing.assert_allclose(np.asarray(k_out16.astype(jnp.float32)), k_ref16,
                               rtol=0.05, atol=0.05)
    np.testing.assert_allclose(np.asarray(q_out16.astype(jnp.float32)), q_ref16,
                               rtol=0.05, atol=0.05)

    print("KERNEL_OK")
</pallas_src>

<mosaic_0001>
module attributes {stable_mosaic.version = 11 : i64} {
  func.func @kernel(%arg0: memref<8x128xf32, #tpu.memory_space<vmem>>, %arg1: memref<8x128xf32, #tpu.memory_space<vmem>>) attributes {dimension_semantics = [], scalar_prefetch = 0 : i64, scratch_operands = 0 : i64, tpu.core_type = #tpu.core_type<tc>} {
    %c0 = arith.constant 0 : index
    %c0_0 = arith.constant 0 : index
    %0 = vector.load %arg0[%c0, %c0_0] : memref<8x128xf32, #tpu.memory_space<vmem>>, vector<8x128xf32>
    %c1_i32 = arith.constant 1 : i32
    %1 = tpu.dynamic_rotate %0 by %c1_i32 dim 1 : vector<8x128xf32>, i32 -> vector<8x128xf32>
    %c0_1 = arith.constant 0 : index
    %c0_2 = arith.constant 0 : index
    %2 = vector.load %arg1[%c0_1, %c0_2] : memref<8x128xf32, #tpu.memory_space<vmem>>, vector<8x128xf32>
    tpu.vector_store %arg1[%c0_1, %c0_2], %1 {strides = array<i32>} : memref<8x128xf32, #tpu.memory_space<vmem>>, vector<8x128xf32>,
    return
  }
}

</mosaic_0001>

<bundles_post_ra>
// kernel: tpu_custom_call.1
= control target key start
LH: loop header
LB: loop body
LE: loop exit
PB: predicated region body
PF: predicated region fallthrough
CT: control target
= control target key end

     0   :  { %6 = vsyncpa [#allocation3], 0  ;;  %s106_s0 = inlined_call_operand.hbm [shape: f32[8,128], index: 0, kind: input, shape index: {}]   ;;  %s107_s1 = inlined_call_operand.hbm [shape: f32[8,128], index: 1, kind: output, shape index: {}]  }
   0x1   :  { %7 = vsyncpa [#allocation4], 0  ;;  %s87_s6 = smov [#allocation2]  }
   0x2   :  { %s14_s7 = sshll.u32 %s87_s6, 4  ;;  %s15_s7 = int_to_ptr.vmem [resolvable:$true] %s14_s7 }
   0x3   :  { %s51_s8 = scalar_lea.vmem %s15_s7, 128  ;;  %p56_p1 = scmp.lt.s32.totalorder %s15_s7, %s15_s7 }
   0x4   :  { %p52_p0 = scmp.ne.s32.totalorder %s15_s7, %s51_s8  ;;  %p57_p2 = scmp.lt.s32.totalorder %s51_s8, %s51_s8 }
   0x6   :  { %p58_p3 = por %p57_p2, %p56_p1 }
   0x8   :  { %p59_p4 = pnand %p58_p3, %p52_p0 }
   0xa   :  { %62 = shalt.err (!%p59_p4)
}
   0xb   :  { %17 = dma.hbm_to_vmem [thread:$0]  %s106_s0, 128, %s15_s7, [#allocation3]  }
   0xc   :  { %83 = dma.done.wait [#allocation3], 128  }
   0xd   :  { %84 = vsyncadd [#allocation3], 4294967168  ;;  %v21_v0 = vld [vmem:[#allocation2] sm:$0xff]  ;;  %s88_s11 = smov 1   ;;  %s89_s12 = smov [#allocation5]  }
   0xe   :  { %22 = vrot.lane.b32.xlu0 %v21_v0, %s88_s11  ;;  %s31_s13 = sshll.u32 %s89_s12, 4  ;;  %s32_s13 = int_to_ptr.vmem [resolvable:$true] %s31_s13 }
   0xf   :  { %s63_s14 = scalar_lea.vmem %s32_s13, 128  ;;  %p68_p6 = scmp.lt.s32.totalorder %s32_s13, %s32_s13 }
  0x10   :  { %p64_p5 = scmp.ne.s32.totalorder %s32_s13, %s63_s14  ;;  %p69_p7 = scmp.lt.s32.totalorder %s63_s14, %s63_s14 }
  0x12   :  { %p70_p8 = por %p69_p7, %p68_p6 }
  0x14   :  { %p71_p9 = pnand %p70_p8, %p64_p5 }
  0x80   :  { %v23_v1 = vpop.permute.xlu0 %22 }
  0x81   :  { %24 = vst [vmem:[#allocation5] sm:$0xff] %v23_v1 }
  0x82   :  { %74 = shalt.err (!%p71_p9)
}
  0x83   :  { %34 = dma.vmem_to_hbm [thread:$0]  %s32_s13, 128, %s107_s1, [#allocation4]  }
  0x84   :  { %85 = dma.done.wait [#allocation4], 128  }
  0x85   :  { %86 = vsyncadd [#allocation4], 4294967168 }
  0x86   :  { %38 = vsyncpa [#allocation3], 1 }
  0x87   :  { %39 = vsyncpa [#allocation4], 1 }

</bundles_post_ra>
